<compile_context>
chip_gen: v7x
topology: tpu7x:2x2x1
jax: 0.10.0
libtpu: 0.0.40
codegen_flags: <defaults>
</compile_context>

<pallas_src>
import functools

import jax
import jax.numpy as jnp
from jax.experimental import pallas as pl
from jax.experimental.pallas import tpu as pltpu


def _round_up(x, m):
    return ((x + m - 1) // m) * m


def _dqn_mlp_kernel(x_ref, w1_ref, b1_ref, w2_ref, b2_ref, w3_ref, b3_ref, o_ref):
    """One batch tile of the fused 3-layer MLP. Everything is VMEM-resident."""
    wdt = w1_ref.dtype
    x = x_ref[...].astype(wdt)
    h1 = jnp.dot(x, w1_ref[...], preferred_element_type=jnp.float32) + b1_ref[...]
    h1 = jnp.maximum(h1, 0.0)                                              # ReLU
    h2 = jnp.dot(h1.astype(wdt), w2_ref[...], preferred_element_type=jnp.float32) + b2_ref[...]
    h2 = jnp.maximum(h2, 0.0)                                              # ReLU
    out = jnp.dot(h2.astype(wdt), w3_ref[...], preferred_element_type=jnp.float32) + b3_ref[...]
    o_ref[...] = out.astype(o_ref.dtype)


def prepare_params(params, weights_dtype=jnp.bfloat16):
    """One-time packing of raw [in,out] weights into TPU-friendly padded/cast form.

    Call this once per parameter update (NOT per forward call). Returns
      w1p: (Fp, 256)  weights_dtype   b1p: (1, 256)  f32
      w2p: (256, 128) weights_dtype   b2p: (1, 128)  f32
      w3p: (128, Ap)  weights_dtype   b3p: (1, Ap)   f32
    where Fp/Ap are the feature/action sizes zero-padded to multiples of 128.
    """
    w1, b1, w2, b2, w3, b3 = params
    F, H1 = w1.shape
    H2, A = w3.shape
    Fp = _round_up(F, 128)
    Ap = _round_up(A, 128)

    def pad2(m, rows, cols):
        r, c = m.shape
        return jnp.pad(m, ((0, rows - r), (0, cols - c)))

    w1p = pad2(w1, Fp, H1).astype(weights_dtype)
    w2p = w2.astype(weights_dtype)                      # (256, 128) already aligned
    w3p = pad2(w3, H2, Ap).astype(weights_dtype)
    b1p = b1.reshape(1, H1).astype(jnp.float32)
    b2p = b2.reshape(1, H2).astype(jnp.float32)
    b3p = pad2(b3.reshape(1, A).astype(jnp.float32), 1, Ap)
    return (w1p, b1p, w2p, b2p, w3p, b3p)


_MAX_BATCH_TILE = 256   # rows per grid step; weights stay VMEM-resident across steps


@functools.partial(jax.jit, static_argnames=("action_size",))
def dqn_forward(x, padded_params, action_size):
    """x: [B, flat_input_size] float32 -> [B, action_size] float32."""
    w1p, b1p, w2p, b2p, w3p, b3p = padded_params
    B, F = x.shape
    Fp, H1 = w1p.shape
    H2, Ap = w3p.shape

    # Batch tiling: single grid step for small batches, 256-row tiles for big ones.
    Bp = _round_up(max(B, 8), 8)
    if Bp <= _MAX_BATCH_TILE:
        TB = Bp
    else:
        TB = _MAX_BATCH_TILE
        Bp = _round_up(Bp, TB)

    # Only per-call data prep: zero-pad the (tiny) activation tensor.
    x_p = jnp.pad(x.astype(jnp.float32), ((0, Bp - B), (0, Fp - F)))

    resident = lambda shape: pl.BlockSpec(shape, lambda i: (0, 0))  # loaded once

    out_p = pl.pallas_call(
        _dqn_mlp_kernel,
        out_shape=jax.ShapeDtypeStruct((Bp, Ap), jnp.float32),
        grid=(Bp // TB,),
        in_specs=[
            pl.BlockSpec((TB, Fp), lambda i: (i, 0)),   # x: streamed per batch tile
            resident((Fp, H1)),
            resident((1, H1)),
            resident((H1, H2)),
            resident((1, H2)),
            resident((H2, Ap)),
            resident((1, Ap)),
        ],
        out_specs=pl.BlockSpec((TB, Ap), lambda i: (i, 0)),
        compiler_params=pltpu.CompilerParams(
            dimension_semantics=("parallel",),  # v7x: shard batch tiles over 2 TCs
        ),
    )(x_p, w1p, b1p, w2p, b2p, w3p, b3p)

    return out_p[:B, :action_size]


def init_params(key, flat_input_size, action_size):
    """Deterministic init mimicking nn.Linear default (uniform +/- 1/sqrt(fan_in))."""
    dims = [(flat_input_size, 256), (256, 128), (128, action_size)]
    params = []
    for fan_in, fan_out in dims:
        key, kw, kb = jax.random.split(key, 3)
        bound = 1.0 / jnp.sqrt(jnp.float32(fan_in))
        w = jax.random.uniform(kw, (fan_in, fan_out), jnp.float32, -bound, bound)
        b = jax.random.uniform(kb, (fan_out,), jnp.float32, -bound, bound)
        params += [w, b]
    return tuple(params)


def reference_forward(x, params, weights_dtype=jnp.float32):
    """Pure-JAX reference using the same weight dtype / f32 accumulation as the kernel."""
    w1, b1, w2, b2, w3, b3 = params
    wd = weights_dtype

    def lin(h, w, b):
        return jnp.dot(h.astype(wd), w.astype(wd), preferred_element_type=jnp.float32) + b

    h1 = jnp.maximum(lin(x, w1, b1), 0.0)
    h2 = jnp.maximum(lin(h1, w2, b2), 0.0)
    return lin(h2, w3, b3)


if __name__ == "__main__":
    # Quoridor with board_size=5:
    board_size = 5
    board_input_size = board_size * board_size                          # 25
    walls_input_size = (board_size - 1) * (board_size - 1) * 2          # 32
    flat_input_size = board_input_size + walls_input_size + 2           # 59
    action_size = board_size * board_size + 2 * (board_size - 1) ** 2   # 57

    key = jax.random.PRNGKey(0)
    key, kp = jax.random.split(key)
    params = init_params(kp, flat_input_size, action_size)

    # Packed once, reused for every forward call.
    params_f32 = prepare_params(params, weights_dtype=jnp.float32)    # exact semantics
    params_bf16 = prepare_params(params, weights_dtype=jnp.bfloat16)  # perf config

    for batch in (2, 384):  # 384 exercises the multi-tile (grid > 1) batched path
        key, kx = jax.random.split(key)
        x = jax.random.normal(kx, (batch, flat_input_size), jnp.float32)

        # f32 weights: must match the plain f32 reference tightly.
        out_f32 = jax.block_until_ready(dqn_forward(x, params_f32, action_size))
        ref_f32 = reference_forward(x, params, jnp.float32)
        assert out_f32.shape == (batch, action_size), out_f32.shape
        assert jnp.allclose(out_f32, ref_f32, atol=1e-4, rtol=1e-4), "f32 mismatch"

        # bf16 weights (f32 accumulation): compare against matched bf16 reference.
        out_bf16 = jax.block_until_ready(dqn_forward(x, params_bf16, action_size))
        ref_bf16 = reference_forward(x, params, jnp.bfloat16)
        assert out_bf16.shape == (batch, action_size), out_bf16.shape
        assert jnp.allclose(out_bf16, ref_bf16, atol=2e-3, rtol=2e-3), "bf16 mismatch"

    print("KERNEL_OK")
</pallas_src>

<mosaic_0001>
module attributes {stable_mosaic.version = 11 : i64} {
  func.func @_dqn_mlp_kernel(%arg0: i32, %arg1: memref<8x128xf32, #tpu.memory_space<vmem>>, %arg2: memref<128x256xf32, #tpu.memory_space<vmem>>, %arg3: memref<1x256xf32, #tpu.memory_space<vmem>>, %arg4: memref<256x128xf32, #tpu.memory_space<vmem>>, %arg5: memref<1x128xf32, #tpu.memory_space<vmem>>, %arg6: memref<128x128xf32, #tpu.memory_space<vmem>>, %arg7: memref<1x128xf32, #tpu.memory_space<vmem>>, %arg8: memref<8x128xf32, #tpu.memory_space<vmem>>) attributes {dimension_semantics = [#tpu.dimension_semantics<parallel>], iteration_bounds = array<i64: 1>, scalar_prefetch = 0 : i64, scratch_operands = 0 : i64, tpu.core_type = #tpu.core_type<tc>, window_params = [{transform_indices = @transform_0, window_bounds = array<i64: 8, 128>}, {pipeline_mode = #tpu.pipeline_mode<synchronous>, transform_indices = @transform_1, window_bounds = array<i64: 128, 256>}, {pipeline_mode = #tpu.pipeline_mode<synchronous>, transform_indices = @transform_2, window_bounds = array<i64: 1, 256>}, {pipeline_mode = #tpu.pipeline_mode<synchronous>, transform_indices = @transform_3, window_bounds = array<i64: 256, 128>}, {pipeline_mode = #tpu.pipeline_mode<synchronous>, transform_indices = @transform_4, window_bounds = array<i64: 1, 128>}, {pipeline_mode = #tpu.pipeline_mode<synchronous>, transform_indices = @transform_5, window_bounds = array<i64: 128, 128>}, {pipeline_mode = #tpu.pipeline_mode<synchronous>, transform_indices = @transform_6, window_bounds = array<i64: 1, 128>}, {transform_indices = @transform_7, window_bounds = array<i64: 8, 128>}]} {
    %c0 = arith.constant 0 : index
    %c0_0 = arith.constant 0 : index
    %0 = vector.load %arg1[%c0, %c0_0] : memref<8x128xf32, #tpu.memory_space<vmem>>, vector<8x128xf32>
    %c0_1 = arith.constant 0 : index
    %c0_2 = arith.constant 0 : index
    %1 = vector.load %arg2[%c0_1, %c0_2] : memref<128x256xf32, #tpu.memory_space<vmem>>, vector<128x256xf32>
    %cst = arith.constant dense<0.000000e+00> : vector<8x256xf32>
    %2 = tpu.matmul %0, %1, %cst {dimension_numbers = #tpu.dot_dimension_numbers<[1], [0], [0], [1], [0, 0, 1, 1], [], []>} : vector<8x128xf32>, vector<128x256xf32>, vector<8x256xf32> -> vector<8x256xf32>
    %c0_3 = arith.constant 0 : index
    %c0_4 = arith.constant 0 : index
    %3 = vector.load %arg3[%c0_3, %c0_4] : memref<1x256xf32, #tpu.memory_space<vmem>>, vector<1x256xf32>
    %4 = vector.broadcast %3 : vector<1x256xf32> to vector<8x256xf32>
    %5 = arith.addf %2, %4 : vector<8x256xf32>
    %cst_5 = arith.constant 0.000000e+00 : f32
    %6 = vector.broadcast %cst_5 : f32 to vector<8x256xf32>
    %7 = arith.maximumf %5, %6 : vector<8x256xf32>
    %c0_6 = arith.constant 0 : index
    %c0_7 = arith.constant 0 : index
    %8 = vector.load %arg4[%c0_6, %c0_7] : memref<256x128xf32, #tpu.memory_space<vmem>>, vector<256x128xf32>
    %cst_8 = arith.constant dense<0.000000e+00> : vector<8x128xf32>
    %9 = tpu.matmul %7, %8, %cst_8 {dimension_numbers = #tpu.dot_dimension_numbers<[1], [0], [0], [1], [0, 0, 1, 1], [], []>} : vector<8x256xf32>, vector<256x128xf32>, vector<8x128xf32> -> vector<8x128xf32>
    %c0_9 = arith.constant 0 : index
    %c0_10 = arith.constant 0 : index
    %10 = vector.load %arg5[%c0_9, %c0_10] : memref<1x128xf32, #tpu.memory_space<vmem>>, vector<1x128xf32>
    %11 = vector.broadcast %10 : vector<1x128xf32> to vector<8x128xf32>
    %12 = arith.addf %9, %11 : vector<8x128xf32>
    %cst_11 = arith.constant 0.000000e+00 : f32
    %13 = vector.broadcast %cst_11 : f32 to vector<8x128xf32>
    %14 = arith.maximumf %12, %13 : vector<8x128xf32>
    %c0_12 = arith.constant 0 : index
    %c0_13 = arith.constant 0 : index
    %15 = vector.load %arg6[%c0_12, %c0_13] : memref<128x128xf32, #tpu.memory_space<vmem>>, vector<128x128xf32>
    %cst_14 = arith.constant dense<0.000000e+00> : vector<8x128xf32>
    %16 = tpu.matmul %14, %15, %cst_14 {dimension_numbers = #tpu.dot_dimension_numbers<[1], [0], [0], [1], [0, 0, 1, 1], [], []>} : vector<8x128xf32>, vector<128x128xf32>, vector<8x128xf32> -> vector<8x128xf32>
    %c0_15 = arith.constant 0 : index
    %c0_16 = arith.constant 0 : index
    %17 = vector.load %arg7[%c0_15, %c0_16] : memref<1x128xf32, #tpu.memory_space<vmem>>, vector<1x128xf32>
    %18 = vector.broadcast %17 : vector<1x128xf32> to vector<8x128xf32>
    %19 = arith.addf %16, %18 : vector<8x128xf32>
    %c0_17 = arith.constant 0 : index
    %c0_18 = arith.constant 0 : index
    %20 = vector.load %arg8[%c0_17, %c0_18] : memref<8x128xf32, #tpu.memory_space<vmem>>, vector<8x128xf32>
    tpu.vector_store %arg8[%c0_17, %c0_18], %19 {strides = array<i32>} : memref<8x128xf32, #tpu.memory_space<vmem>>, vector<8x128xf32>,
    return
  }
  func.func @transform_0(%arg0: i32) -> (i32, i32) {
    %c0_i32 = arith.constant 0 : i32
    %c0_i32_0 = arith.constant 0 : i32
    return %arg0, %c0_i32 : i32, i32
  }
  func.func @transform_1(%arg0: i32) -> (i32, i32) {
    %c0_i32 = arith.constant 0 : i32
    %c0_i32_0 = arith.constant 0 : i32
    %c0_i32_1 = arith.constant 0 : i32
    return %c0_i32, %c0_i32_0 : i32, i32
  }
  func.func @transform_2(%arg0: i32) -> (i32, i32) {
    %c0_i32 = arith.constant 0 : i32
    %c0_i32_0 = arith.constant 0 : i32
    %c0_i32_1 = arith.constant 0 : i32
    return %c0_i32, %c0_i32_0 : i32, i32
  }
  func.func @transform_3(%arg0: i32) -> (i32, i32) {
    %c0_i32 = arith.constant 0 : i32
    %c0_i32_0 = arith.constant 0 : i32
    %c0_i32_1 = arith.constant 0 : i32
    return %c0_i32, %c0_i32_0 : i32, i32
  }
  func.func @transform_4(%arg0: i32) -> (i32, i32) {
    %c0_i32 = arith.constant 0 : i32
    %c0_i32_0 = arith.constant 0 : i32
    %c0_i32_1 = arith.constant 0 : i32
    return %c0_i32, %c0_i32_0 : i32, i32
  }
  func.func @transform_5(%arg0: i32) -> (i32, i32) {
    %c0_i32 = arith.constant 0 : i32
    %c0_i32_0 = arith.constant 0 : i32
    %c0_i32_1 = arith.constant 0 : i32
    return %c0_i32, %c0_i32_0 : i32, i32
  }
  func.func @transform_6(%arg0: i32) -> (i32, i32) {
    %c0_i32 = arith.constant 0 : i32
    %c0_i32_0 = arith.constant 0 : i32
    %c0_i32_1 = arith.constant 0 : i32
    return %c0_i32, %c0_i32_0 : i32, i32
  }
  func.func @transform_7(%arg0: i32) -> (i32, i32) {
    %c0_i32 = arith.constant 0 : i32
    %c0_i32_0 = arith.constant 0 : i32
    return %arg0, %c0_i32 : i32, i32
  }
}

</mosaic_0001>

<bundles_post_ra>
// kernel: dqn_forward.1
= control target key start
LH: loop header
LB: loop body
LE: loop exit
PB: predicated region body
PF: predicated region fallthrough
CT: control target
= control target key end

     0   :  { %12 = vsyncpa [#allocation3], 0  ;;  %s761_s0 = inlined_call_operand.vmem [shape: f32[8,128], index: 0, kind: input, shape index: {}]   ;;  %s762_s1 = inlined_call_operand.hbm [shape: f32[128,256], index: 1, kind: input, shape index: {}]   ;;  %s763_s2 = inlined_call_operand.vmem [shape: f32[1,256], index: 2, kind: input, shape index: {}]   ;;  %s764_s3 = inlined_call_operand.hbm [shape: f32[256,128], index: 3, kind: input, shape index: {}]   ;;  %s765_s4 = inlined_call_operand.vmem [shape: f32[1,128], index: 4, kind: input, shape index: {}]   ;;  %s766_s5 = inlined_call_operand.hbm [shape: f32[128,128], index: 5, kind: input, shape index: {}]   ;;  %s767_s6 = inlined_call_operand.vmem [shape: f32[1,128], index: 6, kind: input, shape index: {}]   ;;  %s768_s7 = inlined_call_operand.vmem [shape: f32[8,128], index: 7, kind: output, shape index: {}]  }
   0x1   :  { %13 = vsyncpa [#allocation5], 0  ;;  %s652_s24 = smov [#allocation4]   ;;  %s582_s28 = scalar_lea.hbm %s764_s3, 4096 }
   0x2   :  { %s35_s25 = sshll.u32 %s652_s24, 4  ;;  %p583_p0 = scmp.ne.s32.totalorder %s764_s3, %s582_s28  ;;  %s36_s25 = int_to_ptr.vmem [resolvable:$true] %s35_s25 }
   0x3   :  { %p586_p1 = scmp.lt.u32.totalorder %s582_s28, %s764_s3 }
   0x5   :  { %p588_p2 = pnand %p586_p1, %p583_p0 }
   0x7   :  { %591 = shalt.err (!%p588_p2)
}
   0x8   :  { %s592_s10 = scalar_lea.vmem %s36_s25, 4096  ;;  %p597_p4 = scmp.lt.s32.totalorder %s36_s25, %s36_s25 }
   0x9   :  { %p593_p3 = scmp.ne.s32.totalorder %s36_s25, %s592_s10  ;;  %p598_p5 = scmp.lt.s32.totalorder %s592_s10, %s592_s10 }
   0xb   :  { %p599_p6 = por %p598_p5, %p597_p4 }
   0xd   :  { %p600_p7 = pnand %p599_p6, %p593_p3 }
   0xf   :  { %603 = shalt.err (!%p600_p7)
}
  0x10   :  { %s653_s11 = smov 128   ;;  %s654_s12 = smov 8  }
  0x11   :  { %41 = dma.hbm_to_vmem [thread:$0]  %s764_s3, 4096, %s36_s25, [#allocation5], %s653_s11, %s653_s11, %s654_s12  }
  0x12   :  { %s655_s15 = smov [#allocation2]   ;;  %s604_s19 = scalar_lea.hbm %s762_s1, 4096 }
  0x13   :  { %s21_s16 = sshll.u32 %s655_s15, 4  ;;  %p605_p8 = scmp.ne.s32.totalorder %s762_s1, %s604_s19  ;;  %s22_s16 = int_to_ptr.vmem [resolvable:$true] %s21_s16 }
  0x14   :  { %p608_p9 = scmp.lt.u32.totalorder %s604_s19, %s762_s1 }
  0x16   :  { %p610_p10 = pnand %p608_p9, %p605_p8 }
  0x18   :  { %613 = shalt.err (!%p610_p10)
}
  0x19   :  { %s614_s24 = scalar_lea.vmem %s22_s16, 4096  ;;  %p619_p12 = scmp.lt.s32.totalorder %s22_s16, %s22_s16 }
  0x1a   :  { %p615_p11 = scmp.ne.s32.totalorder %s22_s16, %s614_s24  ;;  %p620_p13 = scmp.lt.s32.totalorder %s614_s24, %s614_s24 }
  0x1c   :  { %p621_p0 = por %p620_p13, %p619_p12 }
  0x1e   :  { %p622_p1 = pnand %p621_p0, %p615_p11 }
  0x20   :  { %625 = shalt.err (!%p622_p1)
}
  0x21   :  { %s656_s3 = smov 256   ;;  %s657_s25 = smov 16  }
  0x22   :  { %27 = dma.hbm_to_vmem [thread:$0]  %s762_s1, 4096, %s22_s16, [#allocation3], %s656_s3, %s656_s3, %s657_s25  }
  0x23   :  { %s658_s28 = smov [#allocation6]   ;;  %s626_s9 = scalar_lea.hbm %s766_s5, 2048 }
  0x24   :  { %s49_s29 = sshll.u32 %s658_s28, 4  ;;  %p627_p2 = scmp.ne.s32.totalorder %s766_s5, %s626_s9  ;;  %s50_s29 = int_to_ptr.vmem [resolvable:$true] %s49_s29 }
  0x25   :  { %p630_p3 = scmp.lt.u32.totalorder %s626_s9, %s766_s5 }
  0x27   :  { %p632_p4 = pnand %p630_p3, %p627_p2 }
  0x29   :  { %635 = shalt.err (!%p632_p4)
}
  0x2a   :  { %s636_s17 = scalar_lea.vmem %s50_s29, 2048  ;;  %p641_p6 = scmp.lt.s32.totalorder %s50_s29, %s50_s29 }
  0x2b   :  { %p637_p5 = scmp.ne.s32.totalorder %s50_s29, %s636_s17  ;;  %p642_p7 = scmp.lt.s32.totalorder %s636_s17, %s636_s17 }
  0x2d   :  { %p643_p8 = por %p642_p7, %p641_p6 }
  0x2f   :  { %p644_p9 = pnand %p643_p8, %p637_p5 }
  0x31   :  { %647 = shalt.err (!%p644_p9)
}
  0x32   :  { %55 = dma.hbm_to_vmem [thread:$0]  %s766_s5, 2048, %s50_s29, [#allocation5], %s653_s11, %s653_s11, %s654_s12  }
  0x33   :  { %648 = dma.done.wait [#allocation3], 4096  }
  0x34   :  { %649 = vsyncadd [#allocation3], 4294963200 }
  0x35   :  { %650 = dma.done.wait [#allocation5], 6144  }
  0x36   :  { %651 = vsyncadd [#allocation5], 4294961152  ;;  %v659_v0 = vmov 0.0   ;;  %v69_v1 = vld [vmem:[#allocation2 + $0x8] sm:$0xff]  ;;  %v71_v2 = vld [vmem:[#allocation2 + $0x18] sm:$0xff]  ;;  %vm661_vm0 = vmmov 0  }
  0x37   :  { %176 = vmatprep.mubr.f32.mxu0 %v659_v0  ;;  %v68_v3 = vld [vmem:[#allocation2] sm:$0xff]  ;;  %v484_v4 = vpack.c.bf16 %v71_v2, %v69_v1  ;;  %v70_v5 = vld [vmem:[#allocation2 + $0x10] sm:$0xff]  ;;  %v73_v6 = vld [vmem:[#allocation2 + $0x28] sm:$0xff] }
  0x38   :  { %v75_v7 = vld [vmem:[#allocation2 + $0x38] sm:$0xff]  ;;  %v486_v8 = vpack.c.bf16 %v70_v5, %v68_v3  ;;  %v72_v10 = vld [vmem:[#allocation2 + $0x20] sm:$0xff]  ;;  %v74_v11 = vld [vmem:[#allocation2 + $0x30] sm:$0xff] }
  0x39   :  { %v488_v9 = vpack.c.bf16 %v75_v7, %v73_v6  ;;  %v77_v12 = vld [vmem:[#allocation2 + $0x48] sm:$0xff]  ;;  %485 = vmatprep.subr.bf16.mxu0 %v484_v4  ;;  %v79_v13 = vld [vmem:[#allocation2 + $0x58] sm:$0xff]  ;;  %v490_v14 = vpack.c.bf16 %v74_v11, %v72_v10  ;;  %v76_v16 = vld [vmem:[#allocation2 + $0x40] sm:$0xff] }
  0x3a   :  { %487 = vmatpush1.bf16.msra.mxu0 %v486_v8  ;;  %v492_v15 = vpack.c.bf16 %v79_v13, %v77_v12  ;;  %v78_v17 = vld [vmem:[#allocation2 + $0x50] sm:$0xff]  ;;  %v81_v18 = vld [vmem:[#allocation2 + $0x68] sm:$0xff]  ;;  %v83_v19 = vld [vmem:[#allocation2 + $0x78] sm:$0xff] }
  0x3b   :  { %489 = vmatprep.subr.bf16.mxu0 %v488_v9  ;;  %v494_v20 = vpack.c.bf16 %v78_v17, %v76_v16  ;;  %v496_v21 = vpack.c.bf16 %v83_v19, %v81_v18  ;;  %v80_v22 = vld [vmem:[#allocation2 + $0x60] sm:$0xff]  ;;  %v82_v23 = vld [vmem:[#allocation2 + $0x70] sm:$0xff]  ;;  %v85_v24 = vld [vmem:[#allocation2 + $0x88] sm:$0xff] }
  0x3c   :  { %v87_v25 = vld [vmem:[#allocation2 + $0x98] sm:$0xff]  ;;  %v84_v26 = vld [vmem:[#allocation2 + $0x80] sm:$0xff]  ;;  %v86_v27 = vld [vmem:[#allocation2 + $0x90] sm:$0xff]  ;;  %v498_v31 = vpack.c.bf16 %v82_v23, %v80_v22 }
  0x3d   :  { %v201_v28 = vld [vmem:[#allocation4 + $0x80] sm:$0xff]  ;;  %v202_v29 = vld [vmem:[#allocation4 + $0x88] sm:$0xff]  ;;  %v203_v34 = vld [vmem:[#allocation4 + $0x90] sm:$0xff]  ;;  %v500_v36 = vpack.c.bf16 %v87_v25, %v85_v24  ;;  %v502_v46 = vpack.c.bf16 %v86_v27, %v84_v26 }
  0x3e   :  { %491 = vmatpush1.bf16.msra.mxu0 %v490_v14  ;;  %v185_v30 = vld [vmem:[#allocation4] sm:$0xff]  ;;  %v516_v32 = vpack.c.bf16 %v202_v29, %v201_v28  ;;  %v186_v33 = vld [vmem:[#allocation4 + $0x8] sm:$0xff]  ;;  %v204_v35 = vld [vmem:[#allocation4 + $0x98] sm:$0xff] }
  0x3f   :  { %493 = vmatprep.subr.bf16.mxu0 %v492_v15  ;;  %v518_v37 = vpack.c.bf16 %v186_v33, %v185_v30  ;;  %v520_v38 = vpack.c.bf16 %v204_v35, %v203_v34  ;;  %v187_v39 = vld [vmem:[#allocation4 + $0x10] sm:$0xff]  ;;  %v188_v40 = vld [vmem:[#allocation4 + $0x18] sm:$0xff]  ;;  %v205_v41 = vld [vmem:[#allocation4 + $0xa0] sm:$0xff] }
  0x40   :  { %v89_v42 = vld [vmem:[#allocation2 + $0xa8] sm:$0xff]  ;;  %v91_v43 = vld [vmem:[#allocation2 + $0xb8] sm:$0xff]  ;;  %517 = vmatprep.subr.bf16.mxu1 %v516_v32  ;;  %v522_v45 = vpack.c.bf16 %v188_v40, %v187_v39  ;;  %v88_v47 = vld [vmem:[#allocation2 + $0xa0] sm:$0xff] }
  0x41   :  { %v206_v44 = vld [vmem:[#allocation4 + $0xa8] sm:$0xff]  ;;  %519 = vmatpush3.bf16.msra.mxu1 %v518_v37  ;;  %v189_v49 = vld [vmem:[#allocation4 + $0x20] sm:$0xff]  ;;  %v504_v51 = vpack.c.bf16 %v91_v43, %v89_v42  ;;  %v90_v52 = vld [vmem:[#allocation2 + $0xb0] sm:$0xff] }
  0x42   :  { %495 = vmatpush1.bf16.msra.mxu0 %v494_v20  ;;  %521 = vmatprep.subr.bf16.mxu1 %v520_v38  ;;  %v524_v48 = vpack.c.bf16 %v206_v44, %v205_v41  ;;  %v190_v50 = vld [vmem:[#allocation4 + $0x28] sm:$0xff]  ;;  %v207_v53 = vld [vmem:[#allocation4 + $0xb0] sm:$0xff]  ;;  %v208_v54 = vld [vmem:[#allocation4 + $0xb8] sm:$0xff]  ;;  %v506_v58 = vpack.c.bf16 %v90_v52, %v88_v47  ;;  %v660_v38 = vmov 0.0|0.0  }
  0x43   :  { %497 = vmatprep.subr.bf16.mxu0 %v496_v21  ;;  %v93_v55 = vld [vmem:[#allocation2 + $0xc8] sm:$0xff]  ;;  %v95_v56 = vld [vmem:[#allocation2 + $0xd8] sm:$0xff]  ;;  %v526_v57 = vpack.c.bf16 %v190_v50, %v189_v49  ;;  %v92_v59 = vld [vmem:[#allocation2 + $0xc0] sm:$0xff]  ;;  %v528_v60 = vpack.c.bf16 %v208_v54, %v207_v53  ;;  %v102_v54 = vlaneseq }
  0x44   :  { %v191_v61 = vld [vmem:[#allocation4 + $0x30] sm:$0xff]  ;;  %v192_v62 = vld [vmem:[#allocation4 + $0x38] sm:$0xff]  ;;  %v508_v63 = vpack.c.bf16 %v95_v56, %v93_v55  ;;  %v209_v2 = vld [vmem:[#allocation4 + $0xc0] sm:$0xff] }
  0x45   :  { %523 = vmatpush3.bf16.msra.mxu1 %v522_v45  ;;  %v94_v1 = vld [vmem:[#allocation2 + $0xd0] sm:$0xff]  ;;  %v210_v3 = vld [vmem:[#allocation4 + $0xc8] sm:$0xff]  ;;  %v99_v5 = vld [vmem:[#allocation2 + $0xf8] sm:$0xff]  ;;  %v530_v6 = vpack.c.bf16 %v192_v62, %v191_v61  ;;  %v103_v55 = vshrl.u32 %v102_v54, 7 }
  0x46   :  { %499 = vmatpush1.bf16.msra.mxu0 %v498_v31  ;;  %525 = vmatprep.subr.bf16.mxu1 %v524_v48  ;;  %v97_v4 = vld [vmem:[#allocation2 + $0xe8] sm:$0xff]  ;;  %v510_v7 = vpack.c.bf16 %v94_v1, %v92_v59  ;;  %v96_v8 = vld [vmem:[#allocation2 + $0xe0] sm:$0xff]  ;;  %v532_v9 = vpack.c.bf16 %v210_v3, %v209_v2  ;;  %v98_v13 = vld [vmem:[#allocation2 + $0xf0] sm:$0xff] }
  0x47   :  { %501 = vmatprep.subr.bf16.mxu0 %v500_v36  ;;  %v193_v10 = vld [vmem:[#allocation4 + $0x40] sm:$0xff]  ;;  %v194_v11 = vld [vmem:[#allocation4 + $0x48] sm:$0xff]  ;;  %v512_v12 = vpack.c.bf16 %v99_v5, %v97_v4  ;;  %v211_v14 = vld [vmem:[#allocation4 + $0xd0] sm:$0xff]  ;;  %v514_v17 = vpack.c.bf16 %v98_v13, %v96_v8  ;;  %v104_v56 = vsub.s32 0, %v103_v55 }
  0x48   :  { %v212_v15 = vld [vmem:[#allocation4 + $0xd8] sm:$0xff]  ;;  %v534_v16 = vpack.c.bf16 %v194_v11, %v193_v10  ;;  %v195_v19 = vld [vmem:[#allocation4 + $0x50] sm:$0xff]  ;;  %v213_v21 = vld [vmem:[#allocation4 + $0xe0] sm:$0xff] }
  0x49   :  { %527 = vmatpush3.bf16.msra.mxu1 %v526_v57  ;;  %v536_v18 = vpack.c.bf16 %v212_v15, %v211_v14  ;;  %v196_v20 = vld [vmem:[#allocation4 + $0x58] sm:$0xff]  ;;  %v214_v22 = vld [vmem:[#allocation4 + $0xe8] sm:$0xff]  ;;  %v67_v24 = vld [vmem:[%s761_s0] sm:$0xff] }
  0x4a   :  { %503 = vmatpush1.bf16.msra.mxu0 %v502_v46  ;;  %529 = vmatprep.subr.bf16.mxu1 %v528_v60  ;;  %v538_v23 = vpack.c.bf16 %v196_v20, %v195_v19  ;;  %v540_v25 = vpack.c.bf16 %v214_v22, %v213_v21  ;;  %v197_v26 = vld [vmem:[#allocation4 + $0x60] sm:$0xff]  ;;  %v198_v27 = vld [vmem:[#allocation4 + $0x68] sm:$0xff]  ;;  %v215_v29 = vld [vmem:[#allocation4 + $0xf0] sm:$0xff] }
  0x4b   :  { %505 = vmatprep.subr.bf16.mxu0 %v504_v51  ;;  %v542_v28 = vpack.c.bf16 %v198_v27, %v197_v26  ;;  %v216_v30 = vld [vmem:[#allocation4 + $0xf8] sm:$0xff]  ;;  %v199_v32 = vld [vmem:[#allocation4 + $0x70] sm:$0xff]  ;;  %v295_v35 = vld [vmem:[#allocation6] sm:$0xff] }
  0x4c   :  { %v544_v31 = vpack.c.bf16 %v216_v30, %v215_v29  ;;  %v200_v33 = vld [vmem:[#allocation4 + $0x78] sm:$0xff]  ;;  %v296_v36 = vld [vmem:[#allocation6 + $0x8] sm:$0xff]  ;;  %v297_v37 = vld [vmem:[#allocation6 + $0x10] sm:$0xff] }
  0x4d   :  { %531 = vmatpush3.bf16.msra.mxu1 %v530_v6  ;;  %v546_v34 = vpack.c.bf16 %v200_v33, %v199_v32  ;;  %v549_v39 = vpack.c.bf16 %v296_v36, %v295_v35  ;;  %v298_v40 = vld [vmem:[#allocation6 + $0x18] sm:$0xff]  ;;  %v299_v42 = vld [vmem:[#allocation6 + $0x20] sm:$0xff]  ;;  %v300_v43 = vld [vmem:[#allocation6 + $0x28] sm:$0xff] }
  0x4e   :  { %507 = vmatpush1.bf16.msra.mxu0 %v506_v58  ;;  %533 = vmatprep.subr.bf16.mxu1 %v532_v9  ;;  %v552_v41 = vpack.c.bf16 %v298_v40, %v297_v37  ;;  %v555_v44 = vpack.c.bf16 %v300_v43, %v299_v42  ;;  %v301_v45 = vld [vmem:[#allocation6 + $0x30] sm:$0xff]  ;;  %v302_v46 = vld [vmem:[#allocation6 + $0x38] sm:$0xff]  ;;  %v303_v48 = vld [vmem:[#allocation6 + $0x40] sm:$0xff]  ;;  %v108_v58 = vsub.s32 1, %v103_v55 }
  0x4f   :  { %509 = vmatprep.subr.bf16.mxu0 %v508_v63  ;;  %v558_v47 = vpack.c.bf16 %v302_v46, %v301_v45  ;;  %v304_v49 = vld [vmem:[#allocation6 + $0x48] sm:$0xff]  ;;  %v305_v51 = vld [vmem:[#allocation6 + $0x50] sm:$0xff]  ;;  %v306_v52 = vld [vmem:[#allocation6 + $0x58] sm:$0xff] }
  0x50   :  { %v561_v50 = vpack.c.bf16 %v304_v49, %v303_v48  ;;  %v564_v53 = vpack.c.bf16 %v306_v52, %v305_v51  ;;  %v100_v57 = vld [vmem:[%s763_s2] sm:$0x3]  ;;  %v308_v5 = vld [vmem:[#allocation6 + $0x68] sm:$0xff]  ;;  %v310_v8 = vld [vmem:[#allocation6 + $0x78] sm:$0xff] }
  0x51   :  { %535 = vmatpush3.bf16.msra.mxu1 %v534_v16  ;;  %v105_v59 = vrot.slane %v100_v57, %v104_v56  ;;  %v109_v60 = vrot.slane %v100_v57, %v108_v58  ;;  %v307_v4 = vld [vmem:[#allocation6 + $0x60] sm:$0xff] }
  0x52   :  { %511 = vmatpush1.bf16.msra.mxu0 %v510_v7  ;;  %537 = vmatprep.subr.bf16.mxu1 %v536_v18  ;;  %v567_v6 = vpack.c.bf16 %v308_v5, %v307_v4  ;;  %v309_v7 = vld [vmem:[#allocation6 + $0x70] sm:$0xff]  ;;  %v395_v11 = vld [vmem:[%s765_s4] ss:$0 sm:$0xff] }
  0x53   :  { %513 = vmatprep.subr.bf16.mxu0 %v512_v12  ;;  %v570_v9 = vpack.c.bf16 %v310_v8, %v309_v7  ;;  %v396_v16 = vld [vmem:[%s767_s6] ss:$0 sm:$0xff] }
  0x55   :  { %539 = vmatpush3.bf16.msra.mxu1 %v538_v23 }
  0x56   :  { %515 = vmatpush1.bf16.msra.mxu0 %v514_v17  ;;  %541 = vmatprep.subr.bf16.mxu1 %v540_v25 }
  0x57   :  { %548 = vmatprep.subr.bf16.mxu0 %v660_v38 }
  0x59   :  { %177 = vmatmul.mubr.f32.vlgmr.msra.gmra.mrb[0].mxu0 %v67_v24  ;;  %543 = vmatpush3.bf16.msra.mxu1 %v542_v28 }
  0x5a   :  { %545 = vmatprep.subr.bf16.mxu1 %v544_v31  ;;  %550 = vmatpush3.bf16.msra.mxu0 %v549_v39 }
  0x5b   :  { %551 = vmatprep.subr.bf16.mxu0 %v660_v38  ;;  %481 = vmatprep.mubr.msk.f32.mxu0 %vm661_vm0, %v659_v0 }
  0x5d   :  { %547 = vmatpush3.bf16.msra.mxu1 %v546_v34 }
  0x5e   :  { %553 = vmatpush3.bf16.msra.mxu0 %v552_v41 }
  0x5f   :  { %554 = vmatprep.subr.bf16.mxu0 %v660_v38 }
  0x62   :  { %556 = vmatpush3.bf16.msra.mxu0 %v555_v44 }
  0x63   :  { %557 = vmatprep.subr.bf16.mxu0 %v660_v38 }
  0x66   :  { %559 = vmatpush3.bf16.msra.mxu0 %v558_v47 }
  0x67   :  { %560 = vmatprep.subr.bf16.mxu0 %v660_v38 }
  0x6a   :  { %562 = vmatpush3.bf16.msra.mxu0 %v561_v50 }
  0x6b   :  { %563 = vmatprep.subr.bf16.mxu0 %v660_v38 }
  0x6e   :  { %565 = vmatpush3.bf16.msra.mxu0 %v564_v53 }
  0x6f   :  { %566 = vmatprep.subr.bf16.mxu0 %v660_v38 }
  0x72   :  { %568 = vmatpush3.bf16.msra.mxu0 %v567_v6 }
  0x73   :  { %569 = vmatprep.subr.bf16.mxu0 %v660_v38 }
  0x76   :  { %571 = vmatpush3.bf16.msra.mxu0 %v570_v9 }
 0x12c   :  { %v178_v61 = vpop.f32.mrb[0].mxu0 }
 0x12d   :  { %v179_v62 = vadd.f32 %v178_v61, %v105_v59  ;;  %v180_v63 = vpop.f32.mrb[1].mxu0 }
 0x12e   :  { %v181_v1 = vadd.f32 %v180_v63, %v109_v60 }
 0x12f   :  { %v183_v3 = vmax.f32 %v179_v62, 0.0 }
 0x130   :  { %v184_v2 = vmax.f32 %v181_v1, 0.0 }
 0x132   :  { %288 = vmatprep.mubr.f32.mxu1 %v184_v2 }
 0x133   :  { %289 = vmatmul.mubr.f32.vlgmr.msra.gmra.mrb[0].mxu1 %v183_v3 }
 0x206   :  { %v429_v10 = vpop.f32.mrb[0].mxu1 }
 0x207   :  { %v430_v12 = vpop.f32.mrb[1].mxu1 }
 0x208   :  { %v431_v13 = vadd.f32 %v430_v12, %v429_v10 }
 0x20a   :  { %v291_v14 = vadd.f32 %v431_v13, %v395_v11 }
 0x20c   :  { %v294_v15 = vmax.f32 %v291_v14, 0.0 }
 0x20e   :  { %482 = vmatmul.mubr.f32.vlgmr.msra.gmra.mrb[2].mxu0 %v294_v15 }
 0x2e1   :  { %v384_v17 = vpop.f32.mrb[2].mxu0 }
 0x2e2   :  { %v385_v18 = vadd.f32 %v396_v16, %v384_v17  ;;  %v483_v19 = vpop.f32.mrb[3].mxu0 }
 0x2e4   :  { %388 = vst [vmem:[%s768_s7] sm:$0xff] %v385_v18 }
 0x2e5   :  { %393 = vsyncpa [#allocation3], 1 }
 0x2e6   :  { %394 = vsyncpa [#allocation5], 1 }

</bundles_post_ra>
